<compile_context>
chip_gen: v6e
topology: v6e:2x2x1
jax: 0.10.0
libtpu: 0.0.40
codegen_flags: <defaults>
</compile_context>

<pallas_src>
import functools
import math

import jax
import jax.numpy as jnp
import numpy as np
from jax.experimental import pallas as pl
from jax.experimental.pallas import tpu as pltpu


def _largest_divisor(n, cap, multiple_of=1):
    """Largest d <= cap with n % d == 0 and d % multiple_of == 0, else None."""
    for d in range(min(cap, n), 0, -1):
        if n % d == 0 and d % multiple_of == 0:
            return d
    return None


# ---------------------------------------------------------------------------
# Kernel 1: hoisted, time-independent input projection  (T*B, I) @ (I, 3H)
# ---------------------------------------------------------------------------
def _input_proj_kernel(x_ref, w_ref, b_ref, o_ref):
    acc = jnp.dot(x_ref[...], w_ref[...], preferred_element_type=jnp.float32)
    o_ref[...] = (acc + b_ref[...]).astype(o_ref.dtype)


def _input_projection(x2d, w_i, b_x, out_dtype):
    """x2d: (M, I) compute dtype, w_i: (I, 3H) compute dtype, b_x: (3H,) f32."""
    M, I = x2d.shape
    G = w_i.shape[1]
    # M tile: multiple of 8, <= 512 (MXU-friendly, modest VMEM per block).
    bm = _largest_divisor(M, 512, multiple_of=8)
    if bm is None:
        # "equal full dim" satisfies the (8,128) rule.
        # TODO(synk): pad M to a multiple of 8 for huge prime-ish T*B.
        bm = M
    # N tile over 3H: keeps the weight slab + f32 accumulator small and lets
    # both grid axes split across TensorCores.
    bn = _largest_divisor(G, 1024, multiple_of=128)
    if bn is None:
        bn = G
    return pl.pallas_call(
        _input_proj_kernel,
        out_shape=jax.ShapeDtypeStruct((M, G), out_dtype),
        grid=(M // bm, G // bn),
        in_specs=[
            pl.BlockSpec((bm, I), lambda m, n: (m, 0)),
            pl.BlockSpec((I, bn), lambda m, n: (0, n)),
            pl.BlockSpec((1, bn), lambda m, n: (0, n)),
        ],
        out_specs=pl.BlockSpec((bm, bn), lambda m, n: (m, n)),
        compiler_params=pltpu.CompilerParams(
            dimension_semantics=("parallel", "parallel")),
    )(x2d, w_i, b_x.reshape(1, G))


# ---------------------------------------------------------------------------
# Kernel 2: sequential GRU recurrence over chunks of timesteps
# ---------------------------------------------------------------------------
def _gru_seq_kernel(gx_ref, h0_ref, wh_ref, bhn_ref, out_ref, h_scratch, *,
                    unroll):
    # grid = (batch_blocks [parallel], time_chunks [arbitrary/sequential])
    tc = pl.program_id(1)

    @pl.when(tc == 0)
    def _():
        h_scratch[...] = h0_ref[...].astype(jnp.float32)

    t_chunk = gx_ref.shape[0]
    b_block, H = h_scratch.shape

    w_h = wh_ref[...]                                    # (H, 3H) bf16 resident
    b_hn = jnp.broadcast_to(bhn_ref[...], (b_block, H))  # hoisted broadcast

    def step(s, h):
        # gx holds input-side gates + folded biases, stored bf16; gate math f32.
        gx = gx_ref[s].astype(jnp.float32)               # (B, 3H)
        gh = jnp.dot(h.astype(w_h.dtype), w_h,
                     preferred_element_type=jnp.float32)  # (B, 3H) f32
        r = jax.nn.sigmoid(gx[:, :H] + gh[:, :H])
        z = jax.nn.sigmoid(gx[:, H:2 * H] + gh[:, H:2 * H])
        n = jnp.tanh(gx[:, 2 * H:] + r * (gh[:, 2 * H:] + b_hn))
        # Blend rewritten as n + z*(h - n): one fewer VPU mul per element.
        # TODO(synk): on v5e with tiny H, consider pl.reciprocal(approx=True)
        # based sigmoid if the EUP slot is the binding unit.
        h_new = n + z * (h - n)
        out_ref[s] = h_new.astype(out_ref.dtype)
        return h_new

    h_final = jax.lax.fori_loop(0, t_chunk, step, h_scratch[...],
                                unroll=unroll)
    h_scratch[...] = h_final


def gru_layer(x, h0, params, *, t_chunk=None, batch_block=None,
              compute_dtype=jnp.bfloat16):
    """Run one GRU layer over the full sequence.

    x: (T, B, I) f32 or bf16, h0: (B, H) f32.
    Returns (T, B, H) per-step hiddens in `compute_dtype` (bf16).
    """
    T, B, I = x.shape
    H = h0.shape[1]
    G = 3 * H

    # Fused, gate-concatenated weights ([r | z | n] columns), bf16 for the MXU.
    w_i = jnp.concatenate(
        [params["w_ir"], params["w_iz"], params["w_in"]], axis=1
    ).astype(compute_dtype)                                  # (I, 3H)
    w_h = jnp.concatenate(
        [params["w_hr"], params["w_hz"], params["w_hn"]], axis=1
    ).astype(compute_dtype)                                  # (H, 3H)
    # Fold every bias except b_hn (inside the r*(...) term) into the hoisted
    # input projection.
    b_x = jnp.concatenate(
        [params["b_ir"] + params["b_hr"],
         params["b_iz"] + params["b_hz"],
         params["b_in"]], axis=0)                            # (3H,) f32
    b_hn = params["b_hn"].reshape(1, H)                      # (1, H) f32

    # 1) Hoisted input projection -> bf16 intermediate (halves HBM stream).
    gates_x = _input_projection(
        x.reshape(T * B, I).astype(compute_dtype), w_i, b_x, compute_dtype
    ).reshape(T, B, G)                                       # (T, B, 3H) bf16

    # 2) Sequential recurrence.
    if batch_block is None:
        batch_block = B
        try:
            kind = jax.devices()[0].device_kind.lower()
        except Exception:
            kind = ""
        # 2-TensorCore chips (v7x): split the batch so the leading "parallel"
        # grid axis has extent >= 2 and both cores run the recurrence.
        # Single-TC chips (v5e/v6e): keep the full batch as one block.
        if any(s in kind for s in ("v7", "7x")) and B >= 32 and (B // 2) % 16 == 0:
            batch_block = B // 2
    assert B % batch_block == 0
    # bf16 blocks: the second-to-last block dim must be a (packed) sublane-tile
    # multiple or equal to the full dim.
    assert batch_block == B or batch_block % 16 == 0, \
        "batch_block must equal B or be a multiple of 16"

    if t_chunk is None:
        # Cap the per-copy gates_x block at ~4 MiB so double-buffering fits the
        # v7x 32 MiB default scoped VMEM with room for W_h and the output blocks.
        cap = max(1, min(32, (4 * 1024 * 1024) // max(1, batch_block * G * 2)))
        t_chunk = _largest_divisor(T, cap) or 1
    assert T % t_chunk == 0

    # Size-aware unroll: full unroll only while per-step live values are a
    # handful of vregs; otherwise cap to keep register pressure bounded.
    unroll = int(t_chunk) if batch_block * G <= 8192 else int(min(8, t_chunk))

    grid = (B // batch_block, T // t_chunk)

    # Explicit VMEM budget with headroom (v7x: 64 MiB physical).
    vmem_needed = (2 * t_chunk * batch_block * G * 2        # gx bf16, dbl-buf
                   + 2 * t_chunk * batch_block * H * 2      # out bf16, dbl-buf
                   + H * G * 2                              # W_h, single-buf
                   + 3 * batch_block * H * 4                # h0 + f32 scratch
                   + (1 << 20))                             # misc
    vmem_limit = int(min(64 << 20, max(32 << 20, 2 * vmem_needed)))

    def _call(single_buffer_weights):
        inv_kw = ({"pipeline_mode": pl.Buffered(1)}
                  if single_buffer_weights else {})
        return pl.pallas_call(
            functools.partial(_gru_seq_kernel, unroll=unroll),
            out_shape=jax.ShapeDtypeStruct((T, B, H), compute_dtype),
            grid=grid,
            in_specs=[
                pl.BlockSpec((t_chunk, batch_block, G), lambda b, t: (t, b, 0)),
                pl.BlockSpec((batch_block, H), lambda b, t: (b, 0)),
                # Grid-invariant operands: keep a single resident VMEM copy.
                pl.BlockSpec((H, G), lambda b, t: (0, 0), **inv_kw),
                pl.BlockSpec((1, H), lambda b, t: (0, 0), **inv_kw),
            ],
            out_specs=pl.BlockSpec((t_chunk, batch_block, H),
                                   lambda b, t: (t, b, 0)),
            scratch_shapes=[pltpu.VMEM((batch_block, H), jnp.float32)],
            compiler_params=pltpu.CompilerParams(
                # batch blocks are independent (v7x megacore); time is serial.
                dimension_semantics=("parallel", "arbitrary"),
                vmem_limit_bytes=vmem_limit),
        )(gates_x, h0, w_h, b_hn)

    try:
        out = _call(True)
    except Exception:
        # pipeline_mode=Buffered(1) not supported on this jax build: fall back
        # to default double-buffering of the grid-invariant operands.
        out = _call(False)
    return out


def gru_forward(x, init_states, layer_params, batch_first=False,
                t_chunk=None, batch_block=None, compute_dtype=jnp.bfloat16):
    """Replicates GRU.forward of the PyTorch module."""
    if batch_first:
        x = jnp.transpose(x, (1, 0, 2))          # -> (T, B, I)

    num_layers = len(layer_params)
    B = x.shape[1]
    H = layer_params[0]["w_hr"].shape[0]
    out_dtype = x.dtype

    if init_states is None:
        init_states = jnp.zeros((num_layers, B, H), jnp.float32)

    inputs = x
    last_states = []
    for i, params in enumerate(layer_params):
        h_seq = gru_layer(inputs, init_states[i].astype(jnp.float32), params,
                          t_chunk=t_chunk, batch_block=batch_block,
                          compute_dtype=compute_dtype)       # (T, B, H) bf16
        last_states.append(h_seq[-1])
        inputs = h_seq     # next layer consumes bf16 directly (matmul dtype)

    out = inputs.astype(out_dtype)                           # (T, B, H)
    h_n = jnp.stack(last_states, axis=0).astype(out_dtype)   # (L, B, H)

    if batch_first:
        return jnp.transpose(out, (1, 0, 2)), h_n
    return out, h_n


def init_gru_params(key, input_size, hidden_size, num_layers):
    stdv = 1.0 / math.sqrt(hidden_size)
    layer_params = []
    in_sz = input_size
    names_shapes = lambda isz: [
        ("w_ir", (isz, hidden_size)), ("w_hr", (hidden_size, hidden_size)),
        ("w_iz", (isz, hidden_size)), ("w_hz", (hidden_size, hidden_size)),
        ("w_in", (isz, hidden_size)), ("w_hn", (hidden_size, hidden_size)),
        ("b_ir", (hidden_size,)), ("b_hr", (hidden_size,)),
        ("b_iz", (hidden_size,)), ("b_hz", (hidden_size,)),
        ("b_in", (hidden_size,)), ("b_hn", (hidden_size,)),
    ]
    for _ in range(num_layers):
        params = {}
        for name, shape in names_shapes(in_sz):
            key, sub = jax.random.split(key)
            params[name] = jax.random.uniform(
                sub, shape, jnp.float32, minval=-stdv, maxval=stdv)
        layer_params.append(params)
        in_sz = hidden_size
    return layer_params


def gru_reference(x, init_states, layer_params, compute_dtype=jnp.bfloat16):
    """Pure-JAX (lax.scan) reference mirroring the kernel's precision choices
    (bf16 matmul inputs, bf16-stored gates_x and inter-layer activations,
    f32 gate math and hidden-state carry)."""
    inputs = x
    last = []
    for i, p in enumerate(layer_params):
        H = p["w_hr"].shape[0]
        w_i = jnp.concatenate([p["w_ir"], p["w_iz"], p["w_in"]], 1).astype(compute_dtype)
        w_h = jnp.concatenate([p["w_hr"], p["w_hz"], p["w_hn"]], 1).astype(compute_dtype)
        b_x = jnp.concatenate([p["b_ir"] + p["b_hr"],
                               p["b_iz"] + p["b_hz"],
                               p["b_in"]], 0)
        b_hn = p["b_hn"]

        def step(h, x_t, w_i=w_i, w_h=w_h, b_x=b_x, b_hn=b_hn, H=H):
            gx = jnp.dot(x_t.astype(compute_dtype), w_i,
                         preferred_element_type=jnp.float32) + b_x
            gx = gx.astype(compute_dtype).astype(jnp.float32)   # bf16-stored gx
            gh = jnp.dot(h.astype(compute_dtype), w_h,
                         preferred_element_type=jnp.float32)
            r = jax.nn.sigmoid(gx[:, :H] + gh[:, :H])
            z = jax.nn.sigmoid(gx[:, H:2 * H] + gh[:, H:2 * H])
            n = jnp.tanh(gx[:, 2 * H:] + r * (gh[:, 2 * H:] + b_hn))
            h_new = n + z * (h - n)
            return h_new, h_new

        h_last, h_seq = jax.lax.scan(step, init_states[i], inputs)
        last.append(h_last)
        inputs = h_seq.astype(compute_dtype)   # mirror bf16 inter-layer output
    return inputs.astype(jnp.float32), jnp.stack(last, 0)


if __name__ == "__main__":
    # Tile-aligned small demo: H multiple of 128.
    SEQ, BATCH, INPUT, HIDDEN, LAYERS = 16, 16, 16, 128, 2

    key = jax.random.PRNGKey(0)
    kx, kh, kp = jax.random.split(key, 3)

    x = jax.random.normal(kx, (SEQ, BATCH, INPUT), jnp.float32)
    init_states = jax.random.normal(kh, (LAYERS, BATCH, HIDDEN), jnp.float32)
    layer_params = init_gru_params(kp, INPUT, HIDDEN, LAYERS)

    out, h_n = gru_forward(x, init_states, layer_params, batch_first=False)
    jax.block_until_ready((out, h_n))

    assert out.shape == (SEQ, BATCH, HIDDEN)
    assert h_n.shape == (LAYERS, BATCH, HIDDEN)

    out_ref, h_n_ref = gru_reference(x, init_states, layer_params)
    np.testing.assert_allclose(np.asarray(out), np.asarray(out_ref),
                               atol=1e-2, rtol=1e-2)
    np.testing.assert_allclose(np.asarray(h_n), np.asarray(h_n_ref),
                               atol=1e-2, rtol=1e-2)

    print("KERNEL_OK")
</pallas_src>

<mosaic_0001>
module attributes {stable_mosaic.version = 11 : i64} {
  func.func @_input_proj_kernel(%arg0: i32, %arg1: i32, %arg2: memref<256x16xbf16, #tpu.memory_space<vmem>>, %arg3: memref<16x384xbf16, #tpu.memory_space<vmem>>, %arg4: memref<1x384xf32, #tpu.memory_space<vmem>>, %arg5: memref<256x384xbf16, #tpu.memory_space<vmem>>) attributes {dimension_semantics = [#tpu.dimension_semantics<parallel>, #tpu.dimension_semantics<parallel>], iteration_bounds = array<i64: 1, 1>, scalar_prefetch = 0 : i64, scratch_operands = 0 : i64, tpu.core_type = #tpu.core_type<tc>, window_params = [{transform_indices = @transform_0, window_bounds = array<i64: 256, 16>}, {transform_indices = @transform_1, window_bounds = array<i64: 16, 384>}, {transform_indices = @transform_2, window_bounds = array<i64: 1, 384>}, {transform_indices = @transform_3, window_bounds = array<i64: 256, 384>}]} {
    %c0 = arith.constant 0 : index
    %c0_0 = arith.constant 0 : index
    %0 = vector.load %arg2[%c0, %c0_0] : memref<256x16xbf16, #tpu.memory_space<vmem>>, vector<256x16xbf16>
    %c0_1 = arith.constant 0 : index
    %c0_2 = arith.constant 0 : index
    %1 = vector.load %arg3[%c0_1, %c0_2] : memref<16x384xbf16, #tpu.memory_space<vmem>>, vector<16x384xbf16>
    %cst = arith.constant dense<0.000000e+00> : vector<256x384xf32>
    %2 = tpu.matmul %0, %1, %cst {dimension_numbers = #tpu.dot_dimension_numbers<[1], [0], [0], [1], [0, 0, 1, 1], [], []>} : vector<256x16xbf16>, vector<16x384xbf16>, vector<256x384xf32> -> vector<256x384xf32>
    %c0_3 = arith.constant 0 : index
    %c0_4 = arith.constant 0 : index
    %3 = vector.load %arg4[%c0_3, %c0_4] : memref<1x384xf32, #tpu.memory_space<vmem>>, vector<1x384xf32>
    %4 = vector.broadcast %3 : vector<1x384xf32> to vector<256x384xf32>
    %5 = arith.addf %2, %4 : vector<256x384xf32>
    %6 = arith.truncf %5 : vector<256x384xf32> to vector<256x384xbf16>
    %c0_5 = arith.constant 0 : index
    %c0_6 = arith.constant 0 : index
    %7 = vector.load %arg5[%c0_5, %c0_6] : memref<256x384xbf16, #tpu.memory_space<vmem>>, vector<256x384xbf16>
    tpu.vector_store %arg5[%c0_5, %c0_6], %6 {strides = array<i32>} : memref<256x384xbf16, #tpu.memory_space<vmem>>, vector<256x384xbf16>,
    return
  }
  func.func @transform_0(%arg0: i32, %arg1: i32) -> (i32, i32) {
    %c0_i32 = arith.constant 0 : i32
    %c0_i32_0 = arith.constant 0 : i32
    return %arg0, %c0_i32 : i32, i32
  }
  func.func @transform_1(%arg0: i32, %arg1: i32) -> (i32, i32) {
    %c0_i32 = arith.constant 0 : i32
    %c0_i32_0 = arith.constant 0 : i32
    return %c0_i32, %arg1 : i32, i32
  }
  func.func @transform_2(%arg0: i32, %arg1: i32) -> (i32, i32) {
    %c0_i32 = arith.constant 0 : i32
    %c0_i32_0 = arith.constant 0 : i32
    return %c0_i32, %arg1 : i32, i32
  }
  func.func @transform_3(%arg0: i32, %arg1: i32) -> (i32, i32) {
    %c0_i32 = arith.constant 0 : i32
    return %arg0, %arg1 : i32, i32
  }
}

</mosaic_0001>

<bundles_post_ra>
// kernel: tpu_custom_call.1
= control target key start
LH: loop header
LB: loop body
LE: loop exit
PB: predicated region body
PF: predicated region fallthrough
CT: control target
= control target key end

     0   :  { %v1246_v2 = vmov 0   ;;  %vm165_vm0 = vcmask 130048   ;;  %s1493_s0 = inlined_call_operand.vmem [shape: bf16[256,16], index: 0, kind: input, shape index: {}]   ;;  %s1494_s1 = inlined_call_operand.vmem [shape: bf16[16,384], index: 1, kind: input, shape index: {}]   ;;  %s1495_s2 = inlined_call_operand.vmem [shape: f32[1,384], index: 2, kind: input, shape index: {}]   ;;  %s1496_s3 = inlined_call_operand.hbm [shape: bf16[256,384], index: 3, kind: output, shape index: {}]  }
   0x1   :  { %v1204_v0 = vld [vmem:[%s1494_s1 + $0x4] ss:$12 sps:$4 sm:$0xff]   ;;  %v1206_v1 = vld [vmem:[%s1494_s1] ss:$12 sps:$4 sm:$0xff]   ;;  %246 = vmatprep.mubr.bf16.mxu0 %v1246_v2  ;;  %366 = vmatprep.mubr.bf16.mxu1 %v1246_v2  ;;  %v1209_v5 = vld [vmem:[%s1494_s1 + $0x8] ss:$12 sps:$4 sm:$0xff]  }
   0x2   :  { %228 = vmatprep.subr.bf16.mxu0 %v1204_v0  ;;  %1198 = vmatprep.subr.bf16.mxu1 %v1204_v0  ;;  %v1207_v3 = vld [vmem:[%s1493_s0] sm:$0xff]   ;;  %v1210_v6 = vld [vmem:[%s1493_s0 + $0x8] sm:$0xff]   ;;  %v1212_v8 = vld [vmem:[%s1493_s0 + $0x10] sm:$0xff]  }
   0x3   :  { %229 = vmatpush1.bf16.msra.mxu0 %v1206_v1  ;;  %1199 = vmatpush1.bf16.msra.mxu1 %v1206_v1  ;;  %v1208_v4 = vld [vmem:[%s1493_s0 + $0x60] sm:$0xff]   ;;  %v1211_v7 = vld [vmem:[%s1493_s0 + $0x68] sm:$0xff]   ;;  %v1213_v9 = vld [vmem:[%s1493_s0 + $0x70] sm:$0xff]  }
   0x4   :  { %1164 = vmatprep.subr.bf16.mxu1 %v1209_v5 }
   0x6   :  { %987 = vmatmul.mubr.msk.bf16.vlgmr.msra.gmra.mxu0 %vm165_vm0, %v1207_v3  ;;  %999 = vmatmul.mubr.msk.bf16.vlgmr.msra.gmra.mxu1 %vm165_vm0, %v1208_v4 }
   0x7   :  { %256 = vmatprep.mubr.bf16.mxu0 %v1246_v2  ;;  %1165 = vmatpush3.bf16.msra.mxu1 %v1209_v5 }
   0x8   :  { %376 = vmatprep.mubr.bf16.mxu1 %v1246_v2 }
   0xe   :  { %988 = vmatmul.mubr.msk.bf16.gmra.mxu0 %vm165_vm0, %v1210_v6  ;;  %1000 = vmatmul.mubr.msk.bf16.gmra.mxu1 %vm165_vm0, %v1211_v7 }
   0xf   :  { %266 = vmatprep.mubr.bf16.mxu0 %v1246_v2  ;;  %386 = vmatprep.mubr.bf16.mxu1 %v1246_v2 }
  0x10   :  { %8 = vsyncpa [#allocation3], 0  ;;  %v1214_v10 = vld [vmem:[%s1493_s0 + $0x18] sm:$0xff]   ;;  %v1216_v12 = vld [vmem:[%s1493_s0 + $0x20] sm:$0xff]   ;;  %v54_v20 = vlaneseq }
  0x11   :  { %v1215_v11 = vld [vmem:[%s1493_s0 + $0x78] sm:$0xff]   ;;  %v1217_v13 = vld [vmem:[%s1493_s0 + $0x28] sm:$0xff]   ;;  %v1218_v14 = vld [vmem:[%s1493_s0 + $0x30] sm:$0xff]  }
  0x12   :  { %v1219_v15 = vld [vmem:[%s1493_s0 + $0x38] sm:$0xff]   ;;  %v1220_v16 = vld [vmem:[%s1493_s0 + $0x40] sm:$0xff]   ;;  %v1221_v17 = vld [vmem:[%s1493_s0 + $0x48] sm:$0xff]   ;;  %v1375_v21 = vshrl.u32 %v54_v20, 7 }
  0x13   :  { %v1222_v18 = vld [vmem:[%s1493_s0 + $0x50] sm:$0xff]   ;;  %v1223_v19 = vld [vmem:[%s1493_s0 + $0x58] sm:$0xff]   ;;  %v1382_v24 = vld [vmem:[%s1495_s2] sm:$0x7]  ;;  %s1247_s2 = smov [#allocation2]  }
  0x14   :  { %v56_v22 = vsub.s32 0, %v1375_v21  ;;  %v60_v23 = vsub.s32 1, %v1375_v21  ;;  %s957_s23 = sshll.u32 %s1247_s2, 4  ;;  %s958_s23 = int_to_ptr.vmem [resolvable:$true] %s957_s23 }
  0x15   :  { %s1224_s24 = scalar_lea.vmem %s958_s23, 6144  ;;  %p1229_p1 = scmp.lt.s32.totalorder %s958_s23, %s958_s23 }
  0x16   :  { %989 = vmatmul.mubr.msk.bf16.gmra.mxu0 %vm165_vm0, %v1212_v8  ;;  %1001 = vmatmul.mubr.msk.bf16.gmra.mxu1 %vm165_vm0, %v1213_v9  ;;  %v1385_v25 = vrot.slane %v1382_v24, %v56_v22  ;;  %v1388_v26 = vrot.slane %v1382_v24, %v60_v23  ;;  %p1225_p0 = scmp.ne.s32.totalorder %s958_s23, %s1224_s24  ;;  %p1230_p2 = scmp.lt.s32.totalorder %s1224_s24, %s1224_s24 }
  0x17   :  { %276 = vmatprep.mubr.bf16.mxu0 %v1246_v2  ;;  %396 = vmatprep.mubr.bf16.mxu1 %v1246_v2 }
  0x18   :  { %p1231_p3 = por %p1230_p2, %p1229_p1 }
  0x1a   :  { %p1232_p4 = pnand %p1231_p3, %p1225_p0 }
  0x1e   :  { %990 = vmatmul.mubr.msk.bf16.gmra.mxu0 %vm165_vm0, %v1214_v10  ;;  %1002 = vmatmul.mubr.msk.bf16.gmra.mxu1 %vm165_vm0, %v1215_v11 }
  0x1f   :  { %286 = vmatprep.mubr.bf16.mxu0 %v1246_v2  ;;  %1166 = vmatprep.mubr.msk.bf16.mxu1 %vm165_vm0, %v1207_v3 }
  0x26   :  { %991 = vmatmul.mubr.msk.bf16.gmra.mxu0 %vm165_vm0, %v1216_v12  ;;  %1167 = vmatmul.mubr.msk.bf16.vlgmr.msra.gmra.mxu1 %vm165_vm0, %v1210_v6 }
  0x27   :  { %296 = vmatprep.mubr.bf16.mxu0 %v1246_v2  ;;  %1170 = vmatprep.mubr.msk.bf16.mxu1 %vm165_vm0, %v1212_v8 }
  0x2e   :  { %992 = vmatmul.mubr.msk.bf16.gmra.mxu0 %vm165_vm0, %v1217_v13  ;;  %1171 = vmatmul.mubr.msk.bf16.gmra.mxu1 %vm165_vm0, %v1214_v10 }
  0x2f   :  { %306 = vmatprep.mubr.bf16.mxu0 %v1246_v2  ;;  %1174 = vmatprep.mubr.msk.bf16.mxu1 %vm165_vm0, %v1216_v12 }
  0x36   :  { %993 = vmatmul.mubr.msk.bf16.gmra.mxu0 %vm165_vm0, %v1218_v14  ;;  %1175 = vmatmul.mubr.msk.bf16.gmra.mxu1 %vm165_vm0, %v1217_v13 }
  0x37   :  { %316 = vmatprep.mubr.bf16.mxu0 %v1246_v2  ;;  %1178 = vmatprep.mubr.msk.bf16.mxu1 %vm165_vm0, %v1218_v14 }
  0x3e   :  { %994 = vmatmul.mubr.msk.bf16.gmra.mxu0 %vm165_vm0, %v1219_v15  ;;  %1179 = vmatmul.mubr.msk.bf16.gmra.mxu1 %vm165_vm0, %v1219_v15 }
  0x3f   :  { %326 = vmatprep.mubr.bf16.mxu0 %v1246_v2  ;;  %1182 = vmatprep.mubr.msk.bf16.mxu1 %vm165_vm0, %v1220_v16 }
  0x46   :  { %995 = vmatmul.mubr.msk.bf16.gmra.mxu0 %vm165_vm0, %v1220_v16  ;;  %1183 = vmatmul.mubr.msk.bf16.gmra.mxu1 %vm165_vm0, %v1221_v17 }
  0x47   :  { %336 = vmatprep.mubr.bf16.mxu0 %v1246_v2  ;;  %1186 = vmatprep.mubr.msk.bf16.mxu1 %vm165_vm0, %v1222_v18 }
  0x4e   :  { %996 = vmatmul.mubr.msk.bf16.gmra.mxu0 %vm165_vm0, %v1221_v17  ;;  %1187 = vmatmul.mubr.msk.bf16.gmra.mxu1 %vm165_vm0, %v1223_v19 }
  0x4f   :  { %346 = vmatprep.mubr.bf16.mxu0 %v1246_v2  ;;  %1190 = vmatprep.mubr.msk.bf16.mxu1 %vm165_vm0, %v1208_v4 }
  0x56   :  { %997 = vmatmul.mubr.msk.bf16.gmra.mxu0 %vm165_vm0, %v1222_v18  ;;  %1191 = vmatmul.mubr.msk.bf16.gmra.mxu1 %vm165_vm0, %v1211_v7 }
  0x57   :  { %356 = vmatprep.mubr.bf16.mxu0 %v1246_v2  ;;  %1194 = vmatprep.mubr.msk.bf16.mxu1 %vm165_vm0, %v1213_v9 }
  0x5e   :  { %998 = vmatmul.mubr.msk.bf16.gmra.mxu0 %vm165_vm0, %v1223_v19  ;;  %1195 = vmatmul.mubr.msk.bf16.gmra.mxu1 %vm165_vm0, %v1215_v11 }
  0xc6   :  { %v248_v27 = vpop.f32.mrf.mxu0  ;;  %v368_v28 = vpop.f32.mrf.mxu1 }
  0xc7   :  { %v249_v31 = vadd.f32 %v248_v27, %v1385_v25  ;;  %v369_v32 = vadd.f32 %v368_v28, %v1385_v25 }
  0xc8   :  { %v250_v29 = vpop.f32.mrf.mxu0  ;;  %v370_v30 = vpop.f32.mrf.mxu1 }
  0xc9   :  { %v251_v33 = vadd.f32 %v250_v29, %v1388_v26  ;;  %v371_v34 = vadd.f32 %v370_v30, %v1388_v26  ;;  %v64_v29 = vsub.s32 2, %v1375_v21 }
  0xca   :  { %v252_v35 = vpop.f32.mrf.mxu0  ;;  %v372_v36 = vpop.f32.mrf.mxu1 }
  0xcb   :  { %v1083_v37 = vpack.c.bf16 %v251_v33, %v249_v31  ;;  %v1131_v38 = vpack.c.bf16 %v371_v34, %v369_v32  ;;  %v253_v41 = vadd.f32 %v252_v35, %v1385_v25  ;;  %v373_v42 = vadd.f32 %v372_v36, %v1385_v25 }
  0xcc   :  { %v254_v39 = vpop.f32.mrf.mxu0  ;;  %v374_v40 = vpop.f32.mrf.mxu1 }
  0xcd   :  { %888 = vst [vmem:[#allocation2] sm:$0xff] %v1083_v37  ;;  %936 = vst [vmem:[#allocation2 + $0x120] sm:$0xff] %v1131_v38  ;;  %v255_v43 = vadd.f32 %v254_v39, %v1388_v26  ;;  %v375_v44 = vadd.f32 %v374_v40, %v1388_v26  ;;  %v1420_v40 = vrot.slane %v1382_v24, %v64_v29 }
  0xce   :  { %v258_v45 = vpop.f32.mrf.mxu0  ;;  %v378_v46 = vpop.f32.mrf.mxu1 }
  0xcf   :  { %v1085_v47 = vpack.c.bf16 %v255_v43, %v253_v41  ;;  %v1133_v48 = vpack.c.bf16 %v375_v44, %v373_v42  ;;  %v259_v51 = vadd.f32 %v258_v45, %v1385_v25  ;;  %v379_v52 = vadd.f32 %v378_v46, %v1385_v25 }
  0xd0   :  { %v260_v49 = vpop.f32.mrf.mxu0  ;;  %v380_v50 = vpop.f32.mrf.mxu1 }
  0xd1   :  { %890 = vst [vmem:[#allocation2 + $0xc] sm:$0xff] %v1085_v47  ;;  %938 = vst [vmem:[#allocation2 + $0x12c] sm:$0xff] %v1133_v48  ;;  %v261_v53 = vadd.f32 %v260_v49, %v1388_v26  ;;  %v381_v54 = vadd.f32 %v380_v50, %v1388_v26 }
  0xd2   :  { %v262_v55 = vpop.f32.mrf.mxu0  ;;  %v382_v56 = vpop.f32.mrf.mxu1 }
  0xd3   :  { %v1087_v57 = vpack.c.bf16 %v261_v53, %v259_v51  ;;  %v1135_v58 = vpack.c.bf16 %v381_v54, %v379_v52  ;;  %v263_v61 = vadd.f32 %v262_v55, %v1385_v25  ;;  %v383_v62 = vadd.f32 %v382_v56, %v1385_v25 }
  0xd4   :  { %v264_v59 = vpop.f32.mrf.mxu0  ;;  %v384_v60 = vpop.f32.mrf.mxu1 }
  0xd5   :  { %892 = vst [vmem:[#allocation2 + $0x18] sm:$0xff] %v1087_v57  ;;  %940 = vst [vmem:[#allocation2 + $0x138] sm:$0xff] %v1135_v58  ;;  %v265_v63 = vadd.f32 %v264_v59, %v1388_v26  ;;  %v385_v0 = vadd.f32 %v384_v60, %v1388_v26 }
  0xd6   :  { %v268_v1 = vpop.f32.mrf.mxu0  ;;  %v388_v2 = vpop.f32.mrf.mxu1 }
  0xd7   :  { %v1089_v3 = vpack.c.bf16 %v265_v63, %v263_v61  ;;  %v1137_v4 = vpack.c.bf16 %v385_v0, %v383_v62  ;;  %v269_v7 = vadd.f32 %v268_v1, %v1385_v25  ;;  %v389_v8 = vadd.f32 %v388_v2, %v1385_v25 }
  0xd8   :  { %v270_v5 = vpop.f32.mrf.mxu0  ;;  %v390_v6 = vpop.f32.mrf.mxu1 }
  0xd9   :  { %894 = vst [vmem:[#allocation2 + $0x24] sm:$0xff] %v1089_v3  ;;  %942 = vst [vmem:[#allocation2 + $0x144] sm:$0xff] %v1137_v4  ;;  %v271_v9 = vadd.f32 %v270_v5, %v1388_v26  ;;  %v391_v10 = vadd.f32 %v390_v6, %v1388_v26 }
  0xda   :  { %v272_v11 = vpop.f32.mrf.mxu0  ;;  %v392_v12 = vpop.f32.mrf.mxu1 }
  0xdb   :  { %v1091_v13 = vpack.c.bf16 %v271_v9, %v269_v7  ;;  %v1139_v14 = vpack.c.bf16 %v391_v10, %v389_v8  ;;  %v273_v17 = vadd.f32 %v272_v11, %v1385_v25  ;;  %v393_v18 = vadd.f32 %v392_v12, %v1385_v25 }
  0xdc   :  { %v274_v15 = vpop.f32.mrf.mxu0  ;;  %v394_v16 = vpop.f32.mrf.mxu1 }
  0xdd   :  { %896 = vst [vmem:[#allocation2 + $0x30] sm:$0xff] %v1091_v13  ;;  %944 = vst [vmem:[#allocation2 + $0x150] sm:$0xff] %v1139_v14  ;;  %v275_v19 = vadd.f32 %v274_v15, %v1388_v26  ;;  %v395_v20 = vadd.f32 %v394_v16, %v1388_v26 }
  0xde   :  { %v278_v22 = vpop.f32.mrf.mxu0  ;;  %v398_v23 = vpop.f32.mrf.mxu1 }
  0xdf   :  { %v1093_v27 = vpack.c.bf16 %v275_v19, %v273_v17  ;;  %v1141_v28 = vpack.c.bf16 %v395_v20, %v393_v18  ;;  %v279_v32 = vadd.f32 %v278_v22, %v1385_v25  ;;  %v399_v33 = vadd.f32 %v398_v23, %v1385_v25 }
  0xe0   :  { %v280_v30 = vpop.f32.mrf.mxu0  ;;  %v400_v31 = vpop.f32.mrf.mxu1 }
  0xe1   :  { %898 = vst [vmem:[#allocation2 + $0x3c] sm:$0xff] %v1093_v27  ;;  %946 = vst [vmem:[#allocation2 + $0x15c] sm:$0xff] %v1141_v28  ;;  %v281_v34 = vadd.f32 %v280_v30, %v1388_v26  ;;  %v401_v35 = vadd.f32 %v400_v31, %v1388_v26 }
  0xe2   :  { %v282_v36 = vpop.f32.mrf.mxu0  ;;  %v402_v37 = vpop.f32.mrf.mxu1 }
  0xe3   :  { %v1095_v38 = vpack.c.bf16 %v281_v34, %v279_v32  ;;  %v1143_v39 = vpack.c.bf16 %v401_v35, %v399_v33  ;;  %v283_v42 = vadd.f32 %v282_v36, %v1385_v25  ;;  %v403_v43 = vadd.f32 %v402_v37, %v1385_v25 }
  0xe4   :  { %v284_v21 = vpop.f32.mrf.mxu0  ;;  %v404_v41 = vpop.f32.mrf.mxu1 }
  0xe5   :  { %900 = vst [vmem:[#allocation2 + $0x48] sm:$0xff] %v1095_v38  ;;  %948 = vst [vmem:[#allocation2 + $0x168] sm:$0xff] %v1143_v39  ;;  %v285_v44 = vadd.f32 %v284_v21, %v1388_v26  ;;  %v405_v45 = vadd.f32 %v404_v41, %v1388_v26 }
  0xe6   :  { %v288_v46 = vpop.f32.mrf.mxu0  ;;  %v1168_v47 = vpop.f32.mrf.mxu1 }
  0xe7   :  { %v1097_v48 = vpack.c.bf16 %v285_v44, %v283_v42  ;;  %v1145_v49 = vpack.c.bf16 %v405_v45, %v403_v43  ;;  %v450_v50 = vadd.f32 %v1168_v47, %v1420_v40  ;;  %v289_v52 = vadd.f32 %v288_v46, %v1385_v25 }
  0xe8   :  { %v290_v24 = vpop.f32.mrf.mxu0  ;;  %v441_v51 = vpop.f32.mrf.mxu1 }
  0xe9   :  { %902 = vst [vmem:[#allocation2 + $0x54] sm:$0xff] %v1097_v48  ;;  %950 = vst [vmem:[#allocation2 + $0x174] sm:$0xff] %v1145_v49  ;;  %v1088_v53 = vpack.c.bf16 %v450_v50, %v450_v50  ;;  %v291_v54 = vadd.f32 %v290_v24, %v1388_v26  ;;  %v442_v55 = vadd.f32 %v441_v51, %v1420_v40 }
  0xea   :  { %v292_v56 = vpop.f32.mrf.mxu0  ;;  %v1169_v57 = vpop.f32.mrf.mxu1 }
  0xeb   :  { %893 = vst [vmem:[#allocation2 + $0x20] sm:$0xf] %v1088_v53  ;;  %v1099_v58 = vpack.c.bf16 %v291_v54, %v289_v52  ;;  %v1084_v59 = vpack.c.bf16 %v442_v55, %v442_v55  ;;  %v453_v60 = vadd.f32 %v1169_v57, %v1420_v40  ;;  %v293_v63 = vadd.f32 %v292_v56, %v1385_v25 }
  0xec   :  { %v294_v61 = vpop.f32.mrf.mxu0  ;;  %v444_v62 = vpop.f32.mrf.mxu1 }
  0xed   :  { %904 = vst [vmem:[#allocation2 + $0x60] sm:$0xff] %v1099_v58  ;;  %889 = vst [vmem:[#allocation2 + $0x8] sm:$0xf] %v1084_v59  ;;  %v1090_v0 = vpack.c.bf16 %v453_v60, %v453_v60  ;;  %v295_v1 = vadd.f32 %v294_v61, %v1388_v26  ;;  %v445_v2 = vadd.f32 %v444_v62, %v1420_v40 }
  0xee   :  { %v298_v3 = vpop.f32.mrf.mxu0  ;;  %v1172_v4 = vpop.f32.mrf.mxu1 }
  0xef   :  { %895 = vst [vmem:[#allocation2 + $0x2c] sm:$0xf] %v1090_v0  ;;  %v1101_v5 = vpack.c.bf16 %v295_v1, %v293_v63  ;;  %v1086_v6 = vpack.c.bf16 %v445_v2, %v445_v2  ;;  %v466_v7 = vadd.f32 %v1172_v4, %v1420_v40  ;;  %v299_v10 = vadd.f32 %v298_v3, %v1385_v25 }
  0xf0   :  { %v300_v8 = vpop.f32.mrf.mxu0  ;;  %v457_v9 = vpop.f32.mrf.mxu1 }
  0xf1   :  { %906 = vst [vmem:[#allocation2 + $0x6c] sm:$0xff] %v1101_v5  ;;  %891 = vst [vmem:[#allocation2 + $0x14] sm:$0xf] %v1086_v6  ;;  %v1096_v11 = vpack.c.bf16 %v466_v7, %v466_v7  ;;  %v301_v12 = vadd.f32 %v300_v8, %v1388_v26  ;;  %v458_v13 = vadd.f32 %v457_v9, %v1420_v40 }
  0xf2   :  { %v302_v14 = vpop.f32.mrf.mxu0  ;;  %v1173_v15 = vpop.f32.mrf.mxu1 }
  0xf3   :  { %901 = vst [vmem:[#allocation2 + $0x50] sm:$0xf] %v1096_v11  ;;  %v1103_v16 = vpack.c.bf16 %v301_v12, %v299_v10  ;;  %v1092_v17 = vpack.c.bf16 %v458_v13, %v458_v13  ;;  %v469_v18 = vadd.f32 %v1173_v15, %v1420_v40  ;;  %v303_v22 = vadd.f32 %v302_v14, %v1385_v25 }
  0xf4   :  { %v304_v19 = vpop.f32.mrf.mxu0  ;;  %v460_v20 = vpop.f32.mrf.mxu1 }
  0xf5   :  { %908 = vst [vmem:[#allocation2 + $0x78] sm:$0xff] %v1103_v16  ;;  %897 = vst [vmem:[#allocation2 + $0x38] sm:$0xf] %v1092_v17  ;;  %v1098_v23 = vpack.c.bf16 %v469_v18, %v469_v18  ;;  %v305_v27 = vadd.f32 %v304_v19, %v1388_v26  ;;  %v461_v28 = vadd.f32 %v460_v20, %v1420_v40 }
  0xf6   :  { %v308_v29 = vpop.f32.mrf.mxu0  ;;  %v1176_v30 = vpop.f32.mrf.mxu1 }
  0xf7   :  { %903 = vst [vmem:[#allocation2 + $0x5c] sm:$0xf] %v1098_v23  ;;  %v1105_v31 = vpack.c.bf16 %v305_v27, %v303_v22  ;;  %v1094_v32 = vpack.c.bf16 %v461_v28, %v461_v28  ;;  %v482_v33 = vadd.f32 %v1176_v30, %v1420_v40  ;;  %v309_v36 = vadd.f32 %v308_v29, %v1385_v25 }
  0xf8   :  { %v310_v34 = vpop.f32.mrf.mxu0  ;;  %v473_v35 = vpop.f32.mrf.mxu1 }
  0xf9   :  { %910 = vst [vmem:[#allocation2 + $0x84] sm:$0xff] %v1105_v31  ;;  %899 = vst [vmem:[#allocation2 + $0x44] sm:$0xf] %v1094_v32  ;;  %v1104_v37 = vpack.c.bf16 %v482_v33, %v482_v33  ;;  %v311_v38 = vadd.f32 %v310_v34, %v1388_v26  ;;  %v474_v39 = vadd.f32 %v473_v35, %v1420_v40 }
  0xfa   :  { %v312_v21 = vpop.f32.mrf.mxu0  ;;  %v1177_v41 = vpop.f32.mrf.mxu1 }
  0xfb   :  { %909 = vst [vmem:[#allocation2 + $0x80] sm:$0xf] %v1104_v37  ;;  %v1107_v42 = vpack.c.bf16 %v311_v38, %v309_v36  ;;  %v1100_v43 = vpack.c.bf16 %v474_v39, %v474_v39  ;;  %v485_v44 = vadd.f32 %v1177_v41, %v1420_v40  ;;  %v313_v47 = vadd.f32 %v312_v21, %v1385_v25 }
  0xfc   :  { %v314_v45 = vpop.f32.mrf.mxu0  ;;  %v476_v46 = vpop.f32.mrf.mxu1 }
  0xfd   :  { %912 = vst [vmem:[#allocation2 + $0x90] sm:$0xff] %v1107_v42  ;;  %905 = vst [vmem:[#allocation2 + $0x68] sm:$0xf] %v1100_v43  ;;  %v1106_v48 = vpack.c.bf16 %v485_v44, %v485_v44  ;;  %v315_v49 = vadd.f32 %v314_v45, %v1388_v26  ;;  %v477_v50 = vadd.f32 %v476_v46, %v1420_v40 }
  0xfe   :  { %v318_v24 = vpop.f32.mrf.mxu0  ;;  %v1180_v51 = vpop.f32.mrf.mxu1 }
  0xff   :  { %911 = vst [vmem:[#allocation2 + $0x8c] sm:$0xf] %v1106_v48  ;;  %v1109_v52 = vpack.c.bf16 %v315_v49, %v313_v47  ;;  %v1102_v53 = vpack.c.bf16 %v477_v50, %v477_v50  ;;  %v498_v54 = vadd.f32 %v1180_v51, %v1420_v40  ;;  %v319_v57 = vadd.f32 %v318_v24, %v1385_v25 }
 0x100   :  { %v320_v55 = vpop.f32.mrf.mxu0  ;;  %v489_v56 = vpop.f32.mrf.mxu1 }
 0x101   :  { %914 = vst [vmem:[#allocation2 + $0x9c] sm:$0xff] %v1109_v52  ;;  %907 = vst [vmem:[#allocation2 + $0x74] sm:$0xf] %v1102_v53  ;;  %v1112_v58 = vpack.c.bf16 %v498_v54, %v498_v54  ;;  %v321_v59 = vadd.f32 %v320_v55, %v1388_v26  ;;  %v490_v60 = vadd.f32 %v489_v56, %v1420_v40 }
 0x102   :  { %v322_v61 = vpop.f32.mrf.mxu0  ;;  %v1181_v62 = vpop.f32.mrf.mxu1 }
 0x103   :  { %917 = vst [vmem:[#allocation2 + $0xb0] sm:$0xf] %v1112_v58  ;;  %v1111_v63 = vpack.c.bf16 %v321_v59, %v319_v57  ;;  %v1108_v0 = vpack.c.bf16 %v490_v60, %v490_v60  ;;  %v501_v1 = vadd.f32 %v1181_v62, %v1420_v40  ;;  %v323_v4 = vadd.f32 %v322_v61, %v1385_v25 }
 0x104   :  { %v324_v2 = vpop.f32.mrf.mxu0  ;;  %v492_v3 = vpop.f32.mrf.mxu1 }
 0x105   :  { %916 = vst [vmem:[#allocation2 + $0xa8] sm:$0xff] %v1111_v63  ;;  %913 = vst [vmem:[#allocation2 + $0x98] sm:$0xf] %v1108_v0  ;;  %v1114_v5 = vpack.c.bf16 %v501_v1, %v501_v1  ;;  %v325_v6 = vadd.f32 %v324_v2, %v1388_v26  ;;  %v493_v7 = vadd.f32 %v492_v3, %v1420_v40 }
 0x106   :  { %v328_v8 = vpop.f32.mrf.mxu0  ;;  %v1184_v9 = vpop.f32.mrf.mxu1 }
 0x107   :  { %919 = vst [vmem:[#allocation2 + $0xbc] sm:$0xf] %v1114_v5  ;;  %v1113_v10 = vpack.c.bf16 %v325_v6, %v323_v4  ;;  %v1110_v11 = vpack.c.bf16 %v493_v7, %v493_v7  ;;  %v514_v12 = vadd.f32 %v1184_v9, %v1420_v40  ;;  %v329_v15 = vadd.f32 %v328_v8, %v1385_v25 }
 0x108   :  { %v330_v13 = vpop.f32.mrf.mxu0  ;;  %v505_v14 = vpop.f32.mrf.mxu1 }
 0x109   :  { %918 = vst [vmem:[#allocation2 + $0xb4] sm:$0xff] %v1113_v10  ;;  %915 = vst [vmem:[#allocation2 + $0xa4] sm:$0xf] %v1110_v11  ;;  %v1120_v16 = vpack.c.bf16 %v514_v12, %v514_v12  ;;  %v331_v17 = vadd.f32 %v330_v13, %v1388_v26  ;;  %v506_v18 = vadd.f32 %v505_v14, %v1420_v40 }
 0x10a   :  { %v332_v19 = vpop.f32.mrf.mxu0  ;;  %v1185_v20 = vpop.f32.mrf.mxu1 }
 0x10b   :  { %925 = vst [vmem:[#allocation2 + $0xe0] sm:$0xf] %v1120_v16  ;;  %v1115_v22 = vpack.c.bf16 %v331_v17, %v329_v15  ;;  %v1116_v23 = vpack.c.bf16 %v506_v18, %v506_v18  ;;  %v517_v27 = vadd.f32 %v1185_v20, %v1420_v40  ;;  %v333_v30 = vadd.f32 %v332_v19, %v1385_v25 }
 0x10c   :  { %v334_v28 = vpop.f32.mrf.mxu0  ;;  %v508_v29 = vpop.f32.mrf.mxu1 }
 0x10d   :  { %920 = vst [vmem:[#allocation2 + $0xc0] sm:$0xff] %v1115_v22  ;;  %921 = vst [vmem:[#allocation2 + $0xc8] sm:$0xf] %v1116_v23  ;;  %v1122_v31 = vpack.c.bf16 %v517_v27, %v517_v27  ;;  %v335_v32 = vadd.f32 %v334_v28, %v1388_v26  ;;  %v509_v33 = vadd.f32 %v508_v29, %v1420_v40 }
 0x10e   :  { %v338_v34 = vpop.f32.mrf.mxu0  ;;  %v1188_v35 = vpop.f32.mrf.mxu1 }
 0x10f   :  { %927 = vst [vmem:[#allocation2 + $0xec] sm:$0xf] %v1122_v31  ;;  %v1117_v36 = vpack.c.bf16 %v335_v32, %v333_v30  ;;  %v1118_v37 = vpack.c.bf16 %v509_v33, %v509_v33  ;;  %v530_v38 = vadd.f32 %v1188_v35, %v1420_v40  ;;  %v339_v41 = vadd.f32 %v338_v34, %v1385_v25 }
 0x110   :  { %v340_v39 = vpop.f32.mrf.mxu0  ;;  %v521_v21 = vpop.f32.mrf.mxu1 }
 0x111   :  { %922 = vst [vmem:[#allocation2 + $0xcc] sm:$0xff] %v1117_v36  ;;  %923 = vst [vmem:[#allocation2 + $0xd4] sm:$0xf] %v1118_v37  ;;  %v1128_v42 = vpack.c.bf16 %v530_v38, %v530_v38  ;;  %v341_v43 = vadd.f32 %v340_v39, %v1388_v26  ;;  %v522_v44 = vadd.f32 %v521_v21, %v1420_v40 }
 0x112   :  { %v342_v45 = vpop.f32.mrf.mxu0  ;;  %v1189_v46 = vpop.f32.mrf.mxu1 }
 0x113   :  { %933 = vst [vmem:[#allocation2 + $0x110] sm:$0xf] %v1128_v42  ;;  %v1119_v47 = vpack.c.bf16 %v341_v43, %v339_v41  ;;  %v1124_v48 = vpack.c.bf16 %v522_v44, %v522_v44  ;;  %v533_v49 = vadd.f32 %v1189_v46, %v1420_v40  ;;  %v343_v51 = vadd.f32 %v342_v45, %v1385_v25 }
 0x114   :  { %v344_v50 = vpop.f32.mrf.mxu0  ;;  %v524_v24 = vpop.f32.mrf.mxu1 }
 0x115   :  { %924 = vst [vmem:[#allocation2 + $0xd8] sm:$0xff] %v1119_v47  ;;  %929 = vst [vmem:[#allocation2 + $0xf8] sm:$0xf] %v1124_v48  ;;  %v1130_v52 = vpack.c.bf16 %v533_v49, %v533_v49  ;;  %v345_v53 = vadd.f32 %v344_v50, %v1388_v26  ;;  %v525_v54 = vadd.f32 %v524_v24, %v1420_v40 }
 0x116   :  { %v348_v55 = vpop.f32.mrf.mxu0  ;;  %v1192_v56 = vpop.f32.mrf.mxu1 }
 0x117   :  { %935 = vst [vmem:[#allocation2 + $0x11c] sm:$0xf] %v1130_v52  ;;  %v1121_v57 = vpack.c.bf16 %v345_v53, %v343_v51  ;;  %v1126_v58 = vpack.c.bf16 %v525_v54, %v525_v54  ;;  %v546_v59 = vadd.f32 %v1192_v56, %v1420_v40  ;;  %v349_v62 = vadd.f32 %v348_v55, %v1385_v25 }
 0x118   :  { %v350_v60 = vpop.f32.mrf.mxu0  ;;  %v537_v61 = vpop.f32.mrf.mxu1 }
 0x119   :  { %926 = vst [vmem:[#allocation2 + $0xe4] sm:$0xff] %v1121_v57  ;;  %931 = vst [vmem:[#allocation2 + $0x104] sm:$0xf] %v1126_v58  ;;  %v1136_v63 = vpack.c.bf16 %v546_v59, %v546_v59  ;;  %v351_v0 = vadd.f32 %v350_v60, %v1388_v26  ;;  %v538_v1 = vadd.f32 %v537_v61, %v1420_v40 }
 0x11a   :  { %v352_v2 = vpop.f32.mrf.mxu0  ;;  %v1193_v3 = vpop.f32.mrf.mxu1 }
 0x11b   :  { %941 = vst [vmem:[#allocation2 + $0x140] sm:$0xf] %v1136_v63  ;;  %v1123_v4 = vpack.c.bf16 %v351_v0, %v349_v62  ;;  %v1132_v5 = vpack.c.bf16 %v538_v1, %v538_v1  ;;  %v549_v6 = vadd.f32 %v1193_v3, %v1420_v40  ;;  %v353_v9 = vadd.f32 %v352_v2, %v1385_v25 }
 0x11c   :  { %v354_v7 = vpop.f32.mrf.mxu0  ;;  %v540_v8 = vpop.f32.mrf.mxu1 }
 0x11d   :  { %928 = vst [vmem:[#allocation2 + $0xf0] sm:$0xff] %v1123_v4  ;;  %937 = vst [vmem:[#allocation2 + $0x128] sm:$0xf] %v1132_v5  ;;  %v1138_v10 = vpack.c.bf16 %v549_v6, %v549_v6  ;;  %v355_v11 = vadd.f32 %v354_v7, %v1388_v26  ;;  %v541_v12 = vadd.f32 %v540_v8, %v1420_v40 }
 0x11e   :  { %v358_v13 = vpop.f32.mrf.mxu0  ;;  %v1196_v14 = vpop.f32.mrf.mxu1 }
 0x11f   :  { %943 = vst [vmem:[#allocation2 + $0x14c] sm:$0xf] %v1138_v10  ;;  %v1125_v15 = vpack.c.bf16 %v355_v11, %v353_v9  ;;  %v1134_v16 = vpack.c.bf16 %v541_v12, %v541_v12  ;;  %v562_v17 = vadd.f32 %v1196_v14, %v1420_v40  ;;  %v359_v20 = vadd.f32 %v358_v13, %v1385_v25 }
 0x120   :  { %v360_v18 = vpop.f32.mrf.mxu0  ;;  %v553_v19 = vpop.f32.mrf.mxu1 }
 0x121   :  { %930 = vst [vmem:[#allocation2 + $0xfc] sm:$0xff] %v1125_v15  ;;  %939 = vst [vmem:[#allocation2 + $0x134] sm:$0xf] %v1134_v16  ;;  %v1144_v22 = vpack.c.bf16 %v562_v17, %v562_v17  ;;  %v361_v23 = vadd.f32 %v360_v18, %v1388_v26  ;;  %v554_v27 = vadd.f32 %v553_v19, %v1420_v40 }
 0x122   :  { %v362_v28 = vpop.f32.mrf.mxu0  ;;  %v1197_v29 = vpop.f32.mrf.mxu1 }
 0x123   :  { %949 = vst [vmem:[#allocation2 + $0x170] sm:$0xf] %v1144_v22  ;;  %v1127_v30 = vpack.c.bf16 %v361_v23, %v359_v20  ;;  %v1140_v31 = vpack.c.bf16 %v554_v27, %v554_v27  ;;  %v565_v32 = vadd.f32 %v1197_v29, %v1420_v40  ;;  %v363_v35 = vadd.f32 %v362_v28, %v1385_v25 }
 0x124   :  { %v364_v33 = vpop.f32.mrf.mxu0  ;;  %v556_v34 = vpop.f32.mrf.mxu1 }
 0x125   :  { %932 = vst [vmem:[#allocation2 + $0x108] sm:$0xff] %v1127_v30  ;;  %945 = vst [vmem:[#allocation2 + $0x158] sm:$0xf] %v1140_v31  ;;  %v1146_v36 = vpack.c.bf16 %v565_v32, %v565_v32  ;;  %v365_v37 = vadd.f32 %v364_v33, %v1388_v26  ;;  %v557_v38 = vadd.f32 %v556_v34, %v1420_v40 }
 0x127   :  { %951 = vst [vmem:[#allocation2 + $0x17c] sm:$0xf] %v1146_v36  ;;  %v1129_v39 = vpack.c.bf16 %v365_v37, %v363_v35  ;;  %v1142_v21 = vpack.c.bf16 %v557_v38, %v557_v38 }
 0x129   :  { %934 = vst [vmem:[#allocation2 + $0x114] sm:$0xff] %v1129_v39  ;;  %947 = vst [vmem:[#allocation2 + $0x164] sm:$0xf] %v1142_v21 }
 0x12a   :  { %1235 = shalt.err (!%p1232_p4)
}
 0x12b   :  { %s1248_s25 = smov 192   ;;  %s1249_s1 = smov 12  }
 0x12c   :  { %963 = dma.vmem_to_hbm [thread:$0]  %s958_s23, 6144, %s1496_s3, [#allocation3], %s1248_s25, %s1248_s25, %s1249_s1  }
 0x12d   :  { %1244 = dma.done.wait [#allocation3], 6144  }
 0x12e   :  { %1245 = vsyncadd [#allocation3], 4294961152 }
 0x12f   :  { %967 = vsyncpa [#allocation3], 1 }

</bundles_post_ra>
